<compile_context>
chip_gen: v7x
topology: tpu7x:2x2x1
jax: 0.10.0
libtpu: 0.0.40
codegen_flags: <defaults>
</compile_context>

<pallas_src>
import functools
import math

import jax
import jax.numpy as jnp
from jax.experimental import pallas as pl
from jax.experimental.pallas import tpu as pltpu

_CONST = ((1.0, 2.0, 3.0), (4.0, 5.0, 6.0))   # the module's fixed tensor
_CONST_SHAPE = (2, 3)
_PERIOD = _CONST_SHAPE[0] * _CONST_SHAPE[1]   # 6
_W = 128 * _PERIOD // math.gcd(128, _PERIOD)  # lcm(6, 128) = 384 (lane-dense)


def _add_const_row_kernel(x_ref, c_ref, o_ref):
    # x_ref: (tb, W), c_ref: (1, W) -> broadcast add over the sublane axis.
    o_ref[...] = x_ref[...] + c_ref[...]


@functools.lru_cache(maxsize=None)
def _block_budget_bytes():
    """Generation-aware per-block byte budget for the row tile."""
    try:
        vmem = int(pltpu.get_tpu_info().vmem_capacity_bytes)
    except Exception:
        return 6 << 20            # unknown chip: use the v7x-safe choice
    if vmem <= (96 << 20):        # v7x: 64 MiB VMEM per TensorCore
        return 6 << 20            # ~26 MiB double-buffered footprint
    return 8 << 20                # v5e / v6e: 128 MiB physical VMEM


def _row_tile(num_rows, row_width, itemsize, budget_bytes):
    """Balanced, sublane-packed row tile; >=2 blocks when rows allow (v7x)."""
    pack = 8 * max(1, 4 // itemsize)         # 8 f32 / 16 bf16 / 32 int8-fp8
    row_bytes = row_width * itemsize
    budget_rows = max(pack, budget_bytes // row_bytes)
    nblocks = pl.cdiv(num_rows, budget_rows)
    if num_rows >= 2 * pack:
        nblocks = max(nblocks, 2)            # keep both v7x TCs busy
    tb = pl.cdiv(num_rows, nblocks)
    return min(num_rows, pl.cdiv(tb, pack) * pack)


def _add_const_lane_dense(x2, const):
    """x2: (B, W) with W a multiple of 384; adds the repeated constant row."""
    B, W = x2.shape
    dtype = x2.dtype
    itemsize = jnp.dtype(dtype).itemsize
    c_row = jnp.tile(const.reshape(1, _PERIOD), (1, W // _PERIOD))   # (1, W)

    tb = _row_tile(B, W, itemsize, _block_budget_bytes())
    block_bytes = tb * W * itemsize
    # 2x(in block) + 2x(out block) + resident const + slack; never below the
    # 32 MiB scoped default, always well under v7x's 64 MiB physical VMEM.
    vmem_limit = int(max(4 * block_bytes + (2 << 20), 32 << 20))
    grid = (pl.cdiv(B, tb),)

    return pl.pallas_call(
        _add_const_row_kernel,
        out_shape=jax.ShapeDtypeStruct((B, W), dtype),
        grid_spec=pltpu.PrefetchScalarGridSpec(
            num_scalar_prefetch=0,
            grid=grid,
            in_specs=[
                pl.BlockSpec((tb, W), lambda i: (i, 0)),
                pl.BlockSpec((1, W), lambda i: (0, 0)),   # resident constant row
            ],
            out_specs=pl.BlockSpec((tb, W), lambda i: (i, 0)),
        ),
        compiler_params=pltpu.CompilerParams(
            dimension_semantics=("parallel",),
            vmem_limit_bytes=vmem_limit),
    )(x2, c_row)


def torch_tensor_forward(x):
    const = jnp.asarray(_CONST, dtype=x.dtype)                   # (2, 3)
    out_shape = jnp.broadcast_shapes(x.shape, _CONST_SHAPE)      # trailing (2, 3)

    if tuple(x.shape) != tuple(out_shape):
        # Genuine broadcast of x: let XLA fuse broadcast+add directly — no
        # materialized full-size intermediate feeding the kernel.
        return x + const

    total = math.prod(out_shape)

    # Common, lane-dense case: whole array as (B, 384) rows through the kernel.
    if total >= _W and total % _W == 0:
        return _add_const_lane_dense(x.reshape(total // _W, _W), const).reshape(out_shape)

    bulk = (total // _W) * _W
    if bulk == 0:
        # Tiny input (< 384 elems): a kernel launch costs more than the add.
        return x + const

    # Mixed case: lane-dense bulk through the kernel, small (<384-elem,
    # multiple-of-6) tail through plain fused jnp.
    flat = x.reshape(-1)
    y_bulk = _add_const_lane_dense(flat[:bulk].reshape(bulk // _W, _W), const).reshape(-1)
    y_tail = (flat[bulk:].reshape(-1, *_CONST_SHAPE) + const).reshape(-1)
    return jnp.concatenate([y_bulk, y_tail]).reshape(out_shape)


if __name__ == "__main__":
    key = jax.random.PRNGKey(0)
    k0, k1, k2, k3 = jax.random.split(key, 4)
    ref_const = jnp.asarray(_CONST, dtype=jnp.float32)

    # Main kernel path: batch of (2,3) inputs, lane-dense (total % 384 == 0),
    # big enough to split into 2 grid blocks (one per v7x TensorCore).
    x = jax.random.normal(k0, (1024, 2, 3), dtype=jnp.float32)
    out = jax.block_until_ready(torch_tensor_forward(x))
    ref = x + ref_const
    assert out.shape == ref.shape and out.dtype == ref.dtype
    assert jnp.array_equal(out, ref), "lane-dense kernel path mismatch"

    # Bulk (kernel) + lane-sparse tail (jnp) path: 70*6 = 420 = 384 + 36.
    x2 = jax.random.normal(k1, (70, 2, 3), dtype=jnp.float32)
    out2 = jax.block_until_ready(torch_tensor_forward(x2))
    assert jnp.array_equal(out2, x2 + ref_const), "bulk+tail path mismatch"

    # Tiny-input fallback (pure jnp).
    x3 = jax.random.normal(k2, (4, 2, 3), dtype=jnp.float32)
    assert jnp.array_equal(torch_tensor_forward(x3), x3 + ref_const)

    # Genuine-broadcast fallback (x broadcasts against the (2,3) constant).
    x4 = jax.random.normal(k3, (2, 1), dtype=jnp.float32)
    assert jnp.array_equal(torch_tensor_forward(x4), x4 + ref_const)

    print("KERNEL_OK")
</pallas_src>

<mosaic_0001>
module attributes {stable_mosaic.version = 11 : i64} {
  func.func @_add_const_row_kernel(%arg0: i32, %arg1: memref<8x384xf32, #tpu.memory_space<vmem>>, %arg2: memref<1x384xf32, #tpu.memory_space<vmem>>, %arg3: memref<8x384xf32, #tpu.memory_space<vmem>>) attributes {dimension_semantics = [#tpu.dimension_semantics<parallel>], iteration_bounds = array<i64: 2>, scalar_prefetch = 0 : i64, scratch_operands = 0 : i64, tpu.core_type = #tpu.core_type<tc>, window_params = [{transform_indices = @transform_0, window_bounds = array<i64: 8, 384>}, {pipeline_mode = #tpu.pipeline_mode<synchronous>, transform_indices = @transform_1, window_bounds = array<i64: 1, 384>}, {transform_indices = @transform_2, window_bounds = array<i64: 8, 384>}]} {
    %c0 = arith.constant 0 : index
    %c0_0 = arith.constant 0 : index
    %0 = vector.load %arg1[%c0, %c0_0] : memref<8x384xf32, #tpu.memory_space<vmem>>, vector<8x384xf32>
    %c0_1 = arith.constant 0 : index
    %c0_2 = arith.constant 0 : index
    %1 = vector.load %arg2[%c0_1, %c0_2] : memref<1x384xf32, #tpu.memory_space<vmem>>, vector<1x384xf32>
    %2 = vector.broadcast %1 : vector<1x384xf32> to vector<8x384xf32>
    %3 = arith.addf %0, %2 : vector<8x384xf32>
    %c0_3 = arith.constant 0 : index
    %c0_4 = arith.constant 0 : index
    %4 = vector.load %arg3[%c0_3, %c0_4] : memref<8x384xf32, #tpu.memory_space<vmem>>, vector<8x384xf32>
    tpu.vector_store %arg3[%c0_3, %c0_4], %3 {strides = array<i32>} : memref<8x384xf32, #tpu.memory_space<vmem>>, vector<8x384xf32>,
    return
  }
  func.func @transform_0(%arg0: i32) -> (i32, i32) {
    %c0_i32 = arith.constant 0 : i32
    %c0_i32_0 = arith.constant 0 : i32
    return %arg0, %c0_i32 : i32, i32
  }
  func.func @transform_1(%arg0: i32) -> (i32, i32) {
    %c0_i32 = arith.constant 0 : i32
    %c0_i32_0 = arith.constant 0 : i32
    %c0_i32_1 = arith.constant 0 : i32
    return %c0_i32, %c0_i32_0 : i32, i32
  }
  func.func @transform_2(%arg0: i32) -> (i32, i32) {
    %c0_i32 = arith.constant 0 : i32
    %c0_i32_0 = arith.constant 0 : i32
    return %arg0, %c0_i32 : i32, i32
  }
}

</mosaic_0001>

<bundles_post_ra>
// kernel: tpu_custom_call.1
= control target key start
LH: loop header
LB: loop body
LE: loop exit
PB: predicated region body
PF: predicated region fallthrough
CT: control target
= control target key end

     0   :  { %7 = vsyncpa [#allocation3], 0  ;;  %s602_s0 = inlined_call_operand.hbm [shape: f32[16,384], index: 0, kind: input, shape index: {}]   ;;  %s603_s1 = inlined_call_operand.vmem [shape: f32[1,384], index: 1, kind: input, shape index: {}]   ;;  %s604_s2 = inlined_call_operand.hbm [shape: f32[16,384], index: 2, kind: output, shape index: {}]  }
   0x1   :  { %9 = vsyncpa [#allocation3 + $0x1], 0 }
   0x2   :  { %10 = vsyncpa [#allocation4], 0 }
   0x3   :  { %12 = vsyncpa [#allocation4 + $0x1], 0  ;;  %s444_s9 = smov 0   ;;  %s446_s10 = smov 0  }
   0x4   :  { %s448_s11 = smov 0   ;;  %s450_s12 = smov 0  }
   0x5 LB: > { %s465_s13 = sadd.s32 4294967295, %s425_s12   ;;  %s271_s14 = sadd.s32 4294967294, %s425_s12   ;;  %s425_s12 = sphi %s450_s12, %s618_s12   ;;  %s421_s11 = sphi %s448_s11, %s617_s11   ;;  %s417_s10 = sphi %s446_s10, %s616_s10   ;;  %s413_s9 = sphi %s444_s9, %s615_s9  }
   0x6   : > { %s469_s15 = sadd.s32 1, %s425_s12   ;;  %s25_s16 = sadd.s32 1, %s421_s11 }
   0x7   : > { %s22_s17 = ssub.s32 %s425_s12, %s469_s15  ;;  %p32_p0 = scmp.ne.s32.totalorder %s421_s11, %s417_s10 }
   0x8   : > { %p23_p1 = scmp.eq.s32.totalorder %s22_s17, 0  ;;  %p33_p2 = scmp.eq.s32.totalorder %s425_s12, 0 }
   0x9   : > { %p38_p3 = scmp.ne.s32.totalorder %s417_s10, %s413_s9  ;;  %p39_p4 = scmp.eq.s32.totalorder %s465_s13, 0 }
   0xa   : > { %s481_s18 = scalar_select %p23_p1, %s421_s11, %s25_s16  }
   0xb   : > { %p34_p5 = por %p33_p2, %p32_p0  ;;  %p483_p6 = por %p39_p4, %p38_p3 }
   0xc   : > { %p83_p7 = scmp.eq.s32.totalorder %s465_s13, 1  ;;  %p89_p8 = scmp.eq.s32.totalorder %s271_s14, 1 }
   0xd   : > { %p295_p10 = scmp.lt.s32.totalorder %s425_s12, 2  ;;  %s112_s22 = sand.u32 1, %s421_s11  }
   0xe   : > { %p490_p11 = por %p83_p7, %p32_p0  ;;  %p494_p12 = por %p89_p8, %p38_p3 }
   0xf   : > { %s280_s23 = smul.u32 384, %s425_s12  ;;  %p505_p13 = pnand %p295_p10, %p34_p5 }
  0x10   : > { %s607_s20 = scalar_select %p490_p11, 1, 0 }
  0x11   : > { %s608_s21 = scalar_select %p494_p12, 1, 0 }
  0x12   : > { %s279_s24 = smul.u32 24, %s112_s22  ;;  %s503_s27 = scalar_lea.hbm %s602_s0, %s280_s23 }
  0x13   : > { %s113_s3 = scalar_lea.sflag [#allocation3], %s112_s22  ;;  %s329_s4 = scalar_lea.hbm %s503_s27, 384 }
  0x14   : > { %s116_s29 = scalar_lea.vmem [#allocation2], %s279_s24  ;;  %p330_p2 = scmp.ne.s32.totalorder %s503_s27, %s329_s4 }
  0x15   : > { %s124_s30 = sshll.u32 %s116_s29, 4  ;;  %p331_p3 = pneg %p505_p13  ;;  %s510_s30 = int_to_ptr.vmem [resolvable:$true] %s124_s30 }
  0x16   : > { %s334_s7 = scalar_lea.hbm %s602_s0, 768  ;;  %p335_p7 = scmp.lt.u32.totalorder %s503_s27, %s602_s0 }
  0x17   : > { %p332_p4 = pnand %p331_p3, %p330_p2  ;;  %p336_p8 = scmp.lt.u32.totalorder %s334_s7, %s329_s4 }
  0x18   : > { %p338_p9 = scmp.lt.u32.totalorder %s329_s4, %s503_s27 }
  0x19   : > { %p333_p5 = pneg %p332_p4  ;;  %p337_p10 = por %p336_p8, %p335_p7 }
  0x1b   : > { %p339_p0 = por %p338_p9, %p337_p10 }
  0x1d   : > { %p340_p1 = pnand %p339_p0, %p333_p5 }
  0x1f   : > { %343 = shalt.err (!%p340_p1)
}
  0x20   : > { %s344_s16 = scalar_lea.vmem %s510_s30, 384  ;;  %s427_s17 = smov [#allocation2]  }
  0x21   : > { %p345_p2 = scmp.ne.s32.totalorder %s510_s30, %s344_s16  ;;  %s349_s22 = sshll.u32 %s427_s17, 4  ;;  %s350_s22 = int_to_ptr.vmem [resolvable:$false] %s349_s22 }
  0x22   : > { %s351_s23 = scalar_lea.vmem %s350_s22, 768  ;;  %p352_p11 = scmp.lt.s32.totalorder %s510_s30, %s350_s22 }
  0x23   : > { %p347_p4 = pnand %p345_p2, %p331_p3  ;;  %p353_p7 = scmp.lt.s32.totalorder %s351_s23, %s344_s16 }
  0x25   : > { %p348_p12 = pneg %p347_p4  ;;  %p354_p8 = por %p353_p7, %p352_p11 }
  0x27   : > { %p355_p9 = pnand %p354_p8, %p348_p12 }
  0x29   : > { %358 = shalt.err (!%p355_p9)
}
  0x2a   : > { %290 = dma.hbm_to_vmem [thread:$0]  (!%p505_p13), %s503_s27, 384, %s510_s30, %s113_s3  }
  0x2b   : > { %p610_p0 = scmp.lt.s32.totalorder %s425_s12, 3  ;;  %p611_p1 = scmp.ge.s32.totalorder %s425_s12, 1 }
  0x2d   : > { %p130_p3 = pnand %p611_p1, %p610_p0 }
  0x2e   : > { %s543_s24 = sand.u32 (!%p130_p3), 1, %s417_s10  }
  0x2f   : > { %133 = sbr.rel (%p130_p3) target bundleno = 81 (0x51), region = 28  ;;  %s136_s26 = scalar_lea.sflag (!%p130_p3), [#allocation3], %s543_s24 }
  0x30   : > { %s281_s25 = smul.u32 (!%p130_p3), 24, %s543_s24 }
  0x32   : > { %s139_s29 = scalar_lea.vmem (!%p130_p3), [#allocation2], %s281_s25 }
  0x36   : > { %404 = dma.done.wait (%p483_p6), %s136_s26, 384  }
  0x37   : > { %406 = vsyncadd (%p483_p6), %s136_s26, 4294966912  ;;  %v165_v0 = vlaneseq  ;;  %s282_s27 = smul.u32 384, %s465_s13  ;;  %v160_v5 = vld [vmem:[%s139_s29] sm:$0xff]  ;;  %s159_s3 = scalar_lea.vmem [#allocation5], %s281_s25  ;;  %v161_v7 = vld [vmem:[%s139_s29 + $0x8] sm:$0xff] }
  0x38   : > { %v163_v6 = vld [vmem:[%s603_s1] sm:$0x7]  ;;  %s201_s4 = sshll.u32 %s159_s3, 4  ;;  %v162_v10 = vld [vmem:[%s139_s29 + $0x10] sm:$0xff]  ;;  %s187_s6 = scalar_lea.sflag [#allocation4], %s543_s24  ;;  %s555_s4 = int_to_ptr.vmem [resolvable:$true] %s201_s4 }
  0x39   : > { %v166_v1 = vshrl.u32 %v165_v0, 7  ;;  %s560_s5 = scalar_lea.hbm %s604_s2, %s282_s27  ;;  %s359_s7 = scalar_lea.vmem %s555_s4, 384 }
  0x3a   : > { %p360_p6 = scmp.ne.s32.totalorder %s555_s4, %s359_s7  ;;  %p612_p11 = scmp.ne.s32.totalorder %s607_s20, 0 }
  0x3b   : > { %v167_v2 = vsub.s32 0, %v166_v1  ;;  %v171_v3 = vsub.s32 1, %v166_v1  ;;  %v175_v4 = vsub.s32 2, %v166_v1  ;;  %s428_s8 = smov [#allocation5]  }
  0x3c   : > { %p361_p12 = pnand %p360_p6, %p612_p11  ;;  %s363_s14 = sshll.u32 %s428_s8, 4  ;;  %s364_s14 = int_to_ptr.vmem [resolvable:$false] %s363_s14 }
  0x3d   : > { %v168_v8 = vrot.slane %v163_v6, %v167_v2  ;;  %v172_v9 = vrot.slane %v163_v6, %v171_v3  ;;  %v176_v11 = vrot.slane %v163_v6, %v175_v4  ;;  %s365_s16 = scalar_lea.vmem %s364_s14, 768  ;;  %p366_p5 = scmp.lt.s32.totalorder %s555_s4, %s364_s14 }
  0x3e   : > { %p362_p13 = pneg %p361_p12  ;;  %p367_p10 = scmp.lt.s32.totalorder %s365_s16, %s359_s7 }
  0x3f   : > { %v180_v12 = vadd.f32 %v168_v8, %v160_v5  ;;  %v181_v13 = vadd.f32 %v172_v9, %v161_v7  ;;  %v182_v14 = vadd.f32 %v176_v11, %v162_v10 }
  0x40   : > { %p368_p2 = por %p367_p10, %p366_p5 }
  0x41   : > { %183 = vst [vmem:[%s159_s3] sm:$0xff] %v180_v12  ;;  %184 = vst [vmem:[%s159_s3 + $0x8] sm:$0xff] %v181_v13 }
  0x42   : > { %185 = vst [vmem:[%s159_s3 + $0x10] sm:$0xff] %v182_v14  ;;  %p369_p4 = pnand %p368_p2, %p362_p13 }
  0x44   : > { %372 = shalt.err (!%p369_p4)
}
  0x45   : > { %s373_s17 = scalar_lea.hbm %s560_s5, 384  ;;  %s377_s24 = scalar_lea.hbm %s604_s2, 768 }
  0x46   : > { %p374_p7 = scmp.ne.s32.totalorder %s560_s5, %s373_s17  ;;  %p378_p0 = scmp.lt.u32.totalorder %s560_s5, %s604_s2 }
  0x47   : > { %p379_p1 = scmp.lt.u32.totalorder %s377_s24, %s373_s17  ;;  %p381_p6 = scmp.lt.u32.totalorder %s373_s17, %s560_s5 }
  0x48   : > { %p375_p8 = pnand %p374_p7, %p612_p11 }
  0x49   : > { %p380_p3 = por %p379_p1, %p378_p0 }
  0x4a   : > { %p376_p9 = pneg %p375_p8 }
  0x4b   : > { %p382_p12 = por %p381_p6, %p380_p3 }
  0x4d   : > { %p383_p13 = pnand %p382_p12, %p376_p9 }
  0x4f   : > { %386 = shalt.err (!%p383_p13)
}
  0x50   : > { %285 = dma.vmem_to_hbm [thread:$0]  (%p612_p11), %s555_s4, 384, %s560_s5, %s187_s6  }
  0x51 PF: > { %s213_s29 = sand.u32 1, %s413_s9   ;;  %p613_p5 = scmp.ne.s32.totalorder %s608_s21, 0 }
  0x52   : > { %p614_p10 = scmp.ge.s32.totalorder %s425_s12, 2  ;;  %s214_s27 = scalar_lea.sflag [#allocation4], %s213_s29 }
  0x54   : > { %p292_p2 = pnand %p614_p10, %p613_p5 }
  0x56   : > { %408 = dma.done.wait (!%p292_p2), %s214_s27, 384  }
  0x57   : > { %410 = vsyncadd (!%p292_p2), %s214_s27, 4294966912  ;;  %p15_p4 = scmp.ge.s32.totalorder %s469_s15, 4   ;;  %s615_s9 = smov %s417_s10 }
  0x58   : > { %s616_s10 = smov %s421_s11  ;;  %s617_s11 = smov %s481_s18 }
  0x59   : > { %s618_s12 = smov %s469_s15  ;;  %17 = sbr.rel (!%p15_p4) target bundleno = 5 (0x5), region = 73 }
  0x60   :  { %219 = vsyncpa [#allocation3], 1 }
  0x61   :  { %221 = vsyncpa [#allocation3 + $0x1], 1 }
  0x62   :  { %222 = vsyncpa [#allocation4], 1 }
  0x63   :  { %224 = vsyncpa [#allocation4 + $0x1], 1 }

</bundles_post_ra>
